<compile_context>
chip_gen: v6e
topology: v6e:2x2x1
jax: 0.10.0
libtpu: 0.0.40
codegen_flags: <defaults>
</compile_context>

<pallas_src>
import jax
import jax.numpy as jnp
from jax.experimental import pallas as pl
from jax.experimental.pallas import tpu as pltpu

# ---------------------------------------------------------------------------
# Tokenizer (gpn.msa style): vocab index of the 4 nucleotides.
# ---------------------------------------------------------------------------
VOCAB = ["-", "A", "C", "G", "T", "N", "?", "M"]   # V = 8
ID_A = VOCAB.index("A")
ID_C = VOCAB.index("C")
ID_G = VOCAB.index("G")
ID_T = VOCAB.index("T")

# ---------------------------------------------------------------------------
# Model sizes (synthetic, small)
# ---------------------------------------------------------------------------
B = 2            # batch
L = 16           # sequence length
D = 32           # embedding size
A = 4            # aux feature dim
H = 64           # MLP hidden
V = len(VOCAB)   # vocab size
DIN = 2 * (D + A)   # 72  : strand-stacked input feature dim
H2 = 2 * H          # 128 : strand-stacked hidden dim (one full lane tile)


def mlm_logits_kernel(x_ref,        # (B, DIN)  strand-stacked gathered rows
                      w1_ref,       # (DIN, H2) block-diag fused first-layer weight
                      b1_ref,       # (1, H2)
                      w2_ref,       # (H2, 4)   selection/avg-folded second-layer weight
                      bout_ref,     # (1, 4)
                      out_ref):     # (B, 4)
    h = jax.nn.gelu(
        jnp.dot(x_ref[...], w1_ref[...], preferred_element_type=jnp.float32)
        + b1_ref[...],
        approximate=True)                                  # (B, H2) = [h_fwd | h_rev]
    out_ref[...] = (
        jnp.dot(h, w2_ref[...], preferred_element_type=jnp.float32)
        + bout_ref[...])                                   # (B, 4), lane-aligned


def mlm_for_logits(params, input_ids_fwd, aux_fwd, pos_fwd,
                   input_ids_rev, aux_rev, pos_rev):
    emb_table, w_aux, w1, b1, w2, b2 = params

    sel_f = jnp.array([ID_A, ID_C, ID_G, ID_T])
    sel_r = jnp.array([ID_T, ID_G, ID_C, ID_A])
    batch = jnp.arange(B)

    # ---- wrapper-side gathers (tiny, plain XLA ops) --------------------------
    pos_f = pos_fwd.astype(jnp.int32)
    pos_r = pos_rev.astype(jnp.int32)
    tok_f = input_ids_fwd[batch, pos_f]                    # (B,)
    tok_r = input_ids_rev[batch, pos_r]                    # (B,)
    emb_f = emb_table[tok_f]                               # (B, D)
    emb_r = emb_table[tok_r]                               # (B, D)
    auxr_f = aux_fwd[batch, pos_f]                         # (B, A)
    auxr_r = aux_rev[batch, pos_r]                         # (B, A)

    # Strand-stacked input rows along the feature axis.
    x_cat = jnp.concatenate([emb_f, auxr_f, emb_r, auxr_r], axis=1)  # (B, DIN)

    # ---- weight-only constant folding (done once, wrapper side) -------------
    # (emb + aux@W_aux)@W1 == [emb|aux] @ [W1 ; W_aux@W1]
    w1cat = jnp.concatenate([w1, w_aux @ w1], axis=0)      # (D+A, H)
    zero = jnp.zeros_like(w1cat)
    w1big = jnp.concatenate(                               # block-diag (DIN, H2)
        [jnp.concatenate([w1cat, zero], axis=1),
         jnp.concatenate([zero, w1cat], axis=1)], axis=0)
    b1cat = jnp.concatenate([b1, b1]).reshape(1, H2)       # (1, H2)

    # Fold base selection + strand sum + 0.5 average into the second layer.
    w2stack = jnp.concatenate([0.5 * w2[:, sel_f],
                               0.5 * w2[:, sel_r]], axis=0)          # (H2, 4)
    b_avg = (0.5 * (b2[sel_f] + b2[sel_r])).reshape(1, 4)            # (1, 4)

    grid_spec = pl.GridSpec(
        grid=(1,),
        in_specs=[
            pl.BlockSpec((B, DIN), lambda i: (0, 0)),   # x_cat
            pl.BlockSpec((DIN, H2), lambda i: (0, 0)),  # w1big
            pl.BlockSpec((1, H2), lambda i: (0, 0)),    # b1cat
            pl.BlockSpec((H2, 4), lambda i: (0, 0)),    # w2stack
            pl.BlockSpec((1, 4), lambda i: (0, 0)),     # b_avg
        ],
        out_specs=pl.BlockSpec((B, 4), lambda i: (0, 0)),
    )

    return pl.pallas_call(
        mlm_logits_kernel,
        out_shape=jax.ShapeDtypeStruct((B, 4), jnp.float32),
        grid_spec=grid_spec,
        compiler_params=pltpu.CompilerParams(
            dimension_semantics=("arbitrary",)),
    )(x_cat, w1big, b1cat, w2stack, b_avg)


def ref_forward(params, ids_f, aux_f, pos_f, ids_r, aux_r, pos_r):
    emb_table, w_aux, w1, b1, w2, b2 = params

    def get_logits(ids, aux, pos):
        hidden = emb_table[ids] + aux @ w_aux
        h = jax.nn.gelu(hidden @ w1 + b1, approximate=True)
        logits = h @ w2 + b2
        return logits[jnp.arange(ids.shape[0]), pos]

    lf = get_logits(ids_f, aux_f, pos_f)[:, jnp.array([ID_A, ID_C, ID_G, ID_T])]
    lr = get_logits(ids_r, aux_r, pos_r)[:, jnp.array([ID_T, ID_G, ID_C, ID_A])]
    return (lf + lr) / 2


if __name__ == "__main__":
    key = jax.random.PRNGKey(0)
    keys = jax.random.split(key, 12)

    # Deterministic synthetic parameters
    emb_table = jax.random.normal(keys[0], (V, D), jnp.float32) * 0.1
    w_aux = jax.random.normal(keys[1], (A, D), jnp.float32) * 0.1
    w1 = jax.random.normal(keys[2], (D, H), jnp.float32) * 0.1
    b1 = jax.random.normal(keys[3], (H,), jnp.float32) * 0.01
    w2 = jax.random.normal(keys[4], (H, V), jnp.float32) * 0.1
    b2 = jax.random.normal(keys[5], (V,), jnp.float32) * 0.01
    params = (emb_table, w_aux, w1, b1, w2, b2)

    # Deterministic example inputs
    ids_f = jax.random.randint(keys[6], (B, L), 0, V, jnp.int32)
    ids_r = jax.random.randint(keys[7], (B, L), 0, V, jnp.int32)
    aux_f = jax.random.normal(keys[8], (B, L, A), jnp.float32)
    aux_r = jax.random.normal(keys[9], (B, L, A), jnp.float32)
    pos_f = jax.random.randint(keys[10], (B,), 0, L, jnp.int32)
    pos_r = jax.random.randint(keys[11], (B,), 0, L, jnp.int32)

    out = mlm_for_logits(params, ids_f, aux_f, pos_f, ids_r, aux_r, pos_r)
    out = jax.block_until_ready(out)

    expected = ref_forward(params, ids_f, aux_f, pos_f, ids_r, aux_r, pos_r)
    assert out.shape == (B, 4)
    assert jnp.allclose(out, expected, atol=1e-4, rtol=1e-4), (out, expected)

    print("KERNEL_OK")
</pallas_src>

<mosaic_0001>
module attributes {stable_mosaic.version = 11 : i64} {
  func.func @mlm_logits_kernel(%arg0: i32, %arg1: memref<2x72xf32, #tpu.memory_space<vmem>>, %arg2: memref<72x128xf32, #tpu.memory_space<vmem>>, %arg3: memref<1x128xf32, #tpu.memory_space<vmem>>, %arg4: memref<128x4xf32, #tpu.memory_space<vmem>>, %arg5: memref<1x4xf32, #tpu.memory_space<vmem>>, %arg6: memref<2x4xf32, #tpu.memory_space<vmem>>) attributes {dimension_semantics = [#tpu.dimension_semantics<arbitrary>], iteration_bounds = array<i64: 1>, scalar_prefetch = 0 : i64, scratch_operands = 0 : i64, tpu.core_type = #tpu.core_type<tc>, window_params = [{pipeline_mode = #tpu.pipeline_mode<synchronous>, transform_indices = @transform_0, window_bounds = array<i64: 2, 72>}, {pipeline_mode = #tpu.pipeline_mode<synchronous>, transform_indices = @transform_1, window_bounds = array<i64: 72, 128>}, {pipeline_mode = #tpu.pipeline_mode<synchronous>, transform_indices = @transform_2, window_bounds = array<i64: 1, 128>}, {pipeline_mode = #tpu.pipeline_mode<synchronous>, transform_indices = @transform_3, window_bounds = array<i64: 128, 4>}, {pipeline_mode = #tpu.pipeline_mode<synchronous>, transform_indices = @transform_4, window_bounds = array<i64: 1, 4>}, {pipeline_mode = #tpu.pipeline_mode<synchronous>, transform_indices = @transform_5, window_bounds = array<i64: 2, 4>}]} {
    %c0 = arith.constant 0 : index
    %c0_0 = arith.constant 0 : index
    %0 = vector.load %arg1[%c0, %c0_0] : memref<2x72xf32, #tpu.memory_space<vmem>>, vector<2x72xf32>
    %c0_1 = arith.constant 0 : index
    %c0_2 = arith.constant 0 : index
    %1 = vector.load %arg2[%c0_1, %c0_2] : memref<72x128xf32, #tpu.memory_space<vmem>>, vector<72x128xf32>
    %cst = arith.constant dense<0.000000e+00> : vector<2x128xf32>
    %2 = tpu.matmul %0, %1, %cst {dimension_numbers = #tpu.dot_dimension_numbers<[1], [0], [0], [1], [0, 0, 1, 1], [], []>} : vector<2x72xf32>, vector<72x128xf32>, vector<2x128xf32> -> vector<2x128xf32>
    %c0_3 = arith.constant 0 : index
    %c0_4 = arith.constant 0 : index
    %3 = vector.load %arg3[%c0_3, %c0_4] : memref<1x128xf32, #tpu.memory_space<vmem>>, vector<1x128xf32>
    %4 = vector.broadcast %3 : vector<1x128xf32> to vector<2x128xf32>
    %5 = arith.addf %2, %4 : vector<2x128xf32>
    %6 = arith.mulf %5, %5 : vector<2x128xf32>
    %7 = arith.mulf %5, %6 : vector<2x128xf32>
    %cst_5 = arith.constant 4.471500e-02 : f32
    %8 = vector.broadcast %cst_5 : f32 to vector<2x128xf32>
    %9 = arith.mulf %8, %7 : vector<2x128xf32>
    %10 = arith.addf %5, %9 : vector<2x128xf32>
    %cst_6 = arith.constant 0.797884583 : f32
    %11 = vector.broadcast %cst_6 : f32 to vector<2x128xf32>
    %12 = arith.mulf %11, %10 : vector<2x128xf32>
    %13 = math.tanh %12 : vector<2x128xf32>
    %cst_7 = arith.constant 1.000000e+00 : f32
    %14 = vector.broadcast %cst_7 : f32 to vector<2x128xf32>
    %15 = arith.addf %14, %13 : vector<2x128xf32>
    %cst_8 = arith.constant 5.000000e-01 : f32
    %16 = vector.broadcast %cst_8 : f32 to vector<2x128xf32>
    %17 = arith.mulf %16, %15 : vector<2x128xf32>
    %18 = arith.mulf %5, %17 : vector<2x128xf32>
    %c0_9 = arith.constant 0 : index
    %c0_10 = arith.constant 0 : index
    %19 = vector.load %arg4[%c0_9, %c0_10] : memref<128x4xf32, #tpu.memory_space<vmem>>, vector<128x4xf32>
    %cst_11 = arith.constant dense<0.000000e+00> : vector<2x4xf32>
    %20 = tpu.matmul %18, %19, %cst_11 {dimension_numbers = #tpu.dot_dimension_numbers<[1], [0], [0], [1], [0, 0, 1, 1], [], []>} : vector<2x128xf32>, vector<128x4xf32>, vector<2x4xf32> -> vector<2x4xf32>
    %c0_12 = arith.constant 0 : index
    %c0_13 = arith.constant 0 : index
    %21 = vector.load %arg5[%c0_12, %c0_13] : memref<1x4xf32, #tpu.memory_space<vmem>>, vector<1x4xf32>
    %22 = vector.broadcast %21 : vector<1x4xf32> to vector<2x4xf32>
    %23 = arith.addf %20, %22 : vector<2x4xf32>
    %c0_14 = arith.constant 0 : index
    %c0_15 = arith.constant 0 : index
    %24 = vector.load %arg6[%c0_14, %c0_15] : memref<2x4xf32, #tpu.memory_space<vmem>>, vector<2x4xf32>
    tpu.vector_store %arg6[%c0_14, %c0_15], %23 {strides = array<i32>} : memref<2x4xf32, #tpu.memory_space<vmem>>, vector<2x4xf32>,
    return
  }
  func.func @transform_0(%arg0: i32) -> (i32, i32) {
    %c0_i32 = arith.constant 0 : i32
    %c0_i32_0 = arith.constant 0 : i32
    %c0_i32_1 = arith.constant 0 : i32
    return %c0_i32, %c0_i32_0 : i32, i32
  }
  func.func @transform_1(%arg0: i32) -> (i32, i32) {
    %c0_i32 = arith.constant 0 : i32
    %c0_i32_0 = arith.constant 0 : i32
    %c0_i32_1 = arith.constant 0 : i32
    return %c0_i32, %c0_i32_0 : i32, i32
  }
  func.func @transform_2(%arg0: i32) -> (i32, i32) {
    %c0_i32 = arith.constant 0 : i32
    %c0_i32_0 = arith.constant 0 : i32
    %c0_i32_1 = arith.constant 0 : i32
    return %c0_i32, %c0_i32_0 : i32, i32
  }
  func.func @transform_3(%arg0: i32) -> (i32, i32) {
    %c0_i32 = arith.constant 0 : i32
    %c0_i32_0 = arith.constant 0 : i32
    %c0_i32_1 = arith.constant 0 : i32
    return %c0_i32, %c0_i32_0 : i32, i32
  }
  func.func @transform_4(%arg0: i32) -> (i32, i32) {
    %c0_i32 = arith.constant 0 : i32
    %c0_i32_0 = arith.constant 0 : i32
    %c0_i32_1 = arith.constant 0 : i32
    return %c0_i32, %c0_i32_0 : i32, i32
  }
  func.func @transform_5(%arg0: i32) -> (i32, i32) {
    %c0_i32 = arith.constant 0 : i32
    %c0_i32_0 = arith.constant 0 : i32
    %c0_i32_1 = arith.constant 0 : i32
    return %c0_i32, %c0_i32_0 : i32, i32
  }
}

</mosaic_0001>

<bundles_post_ra>
// kernel: tpu_custom_call.1
= control target key start
LH: loop header
LB: loop body
LE: loop exit
PB: predicated region body
PF: predicated region fallthrough
CT: control target
= control target key end

     0   :  { %v343_v1 = vmov 0.0   ;;  %vm344_vm0 = vmmov 0   ;;  %s490_s0 = inlined_call_operand.vmem [shape: f32[2,72], index: 0, kind: input, shape index: {}]   ;;  %s491_s1 = inlined_call_operand.vmem [shape: f32[72,128], index: 1, kind: input, shape index: {}]   ;;  %s492_s2 = inlined_call_operand.vmem [shape: f32[1,128], index: 2, kind: input, shape index: {}]   ;;  %s493_s3 = inlined_call_operand.vmem [shape: f32[128,4], index: 3, kind: input, shape index: {}]   ;;  %s494_s4 = inlined_call_operand.vmem [shape: f32[1,4], index: 4, kind: input, shape index: {}]   ;;  %s495_s5 = inlined_call_operand.hbm [shape: f32[2,4], index: 5, kind: output, shape index: {}]  }
   0x1   :  { %v30_v0 = vld [vmem:[%s491_s1 + $0x40] sm:$0xff]  ;;  %260 = vmatprep.subr.mxu0 %v343_v1  ;;  %v29_v2 = vld [vmem:[%s491_s1 + $0x38] sm:$0xff]  ;;  %278 = vmatprep.mubr.msk.f32.mxu0 %vm344_vm0, %v343_v1  ;;  %v28_v3 = vld [vmem:[%s491_s1 + $0x30] sm:$0xff] }
   0x2   :  { %261 = vmatpush3.msra.mxu0 %v30_v0  ;;  %281 = vmatprep.subr.mxu1 %v343_v1 }
   0x3   :  { %262 = vmatprep.subr.mxu0 %v343_v1  ;;  %313 = vmatprep.mubr.msk.f32.mxu1 %vm344_vm0, %v343_v1 }
   0x4   :  { %10 = vsyncpa [#allocation3], 0  ;;  %263 = vmatpush3.msra.mxu0 %v29_v2  ;;  %v27_v4 = vld [vmem:[%s491_s1 + $0x28] sm:$0xff]  ;;  %v26_v5 = vld [vmem:[%s491_s1 + $0x20] sm:$0xff]  ;;  %vm38_vm1 = vcmask 588800   ;;  %s345_s19 = smov [#allocation2]  }
   0x5   :  { %264 = vmatprep.subr.mxu0 %v343_v1  ;;  %v25_v6 = vld [vmem:[%s491_s1 + $0x18] sm:$0xff]  ;;  %v24_v7 = vld [vmem:[%s491_s1 + $0x10] sm:$0xff]  ;;  %v23_v8 = vld [vmem:[%s491_s1 + $0x8] sm:$0xff]  ;;  %vm214_vm2 = vcmask 25600  }
   0x6   :  { %265 = vmatpush3.msra.mxu0 %v28_v3  ;;  %v22_v9 = vld [vmem:[%s491_s1] sm:$0xff]  ;;  %v136_v11 = vld [vmem:[%s493_s3 + $0x78] sm:$0xff]  ;;  %v135_v12 = vld [vmem:[%s493_s3 + $0x70] sm:$0xff] }
   0x7   :  { %266 = vmatprep.subr.mxu0 %v343_v1  ;;  %v21_v10 = vld [vmem:[%s490_s0] sm:$0x3]  ;;  %282 = vmatpush3.msra.mxu1 %v136_v11  ;;  %v134_v13 = vld [vmem:[%s493_s3 + $0x68] sm:$0xff]  ;;  %v132_v15 = vld [vmem:[%s493_s3 + $0x58] sm:$0xff] }
   0x8   :  { %267 = vmatpush3.msra.mxu0 %v27_v4  ;;  %283 = vmatprep.subr.mxu1 %v343_v1  ;;  %v133_v14 = vld [vmem:[%s493_s3 + $0x60] sm:$0xff]  ;;  %v131_v16 = vld [vmem:[%s493_s3 + $0x50] sm:$0xff]  ;;  %v130_v17 = vld [vmem:[%s493_s3 + $0x48] sm:$0xff] }
   0x9   :  { %268 = vmatprep.subr.mxu0 %v343_v1  ;;  %284 = vmatpush3.msra.mxu1 %v135_v12  ;;  %v129_v18 = vld [vmem:[%s493_s3 + $0x40] sm:$0xff]  ;;  %v128_v19 = vld [vmem:[%s493_s3 + $0x38] sm:$0xff]  ;;  %v127_v20 = vld [vmem:[%s493_s3 + $0x30] sm:$0xff] }
   0xa   :  { %269 = vmatpush3.msra.mxu0 %v26_v5  ;;  %285 = vmatprep.subr.mxu1 %v343_v1  ;;  %v126_v21 = vld [vmem:[%s493_s3 + $0x28] sm:$0xff]  ;;  %v125_v22 = vld [vmem:[%s493_s3 + $0x20] sm:$0xff]  ;;  %v124_v23 = vld [vmem:[%s493_s3 + $0x18] sm:$0xff] }
   0xb   :  { %270 = vmatprep.subr.mxu0 %v343_v1  ;;  %286 = vmatpush3.msra.mxu1 %v134_v13  ;;  %v123_v24 = vld [vmem:[%s493_s3 + $0x10] sm:$0xff]  ;;  %v122_v25 = vld [vmem:[%s493_s3 + $0x8] sm:$0xff]  ;;  %v121_v26 = vld [vmem:[%s493_s3] sm:$0xff] }
   0xc   :  { %271 = vmatpush3.msra.mxu0 %v25_v6  ;;  %287 = vmatprep.subr.mxu1 %v343_v1  ;;  %v230_v27 = vld [vmem:[%s492_s2] ss:$0 sm:$0xff]  ;;  %s222_s2 = sshll.u32 %s345_s19, 4  ;;  %s223_s2 = int_to_ptr.vmem [resolvable:$true] %s222_s2 }
   0xd   :  { %272 = vmatprep.subr.mxu0 %v343_v1  ;;  %288 = vmatpush3.msra.mxu1 %v133_v14  ;;  %v232_v40 = vld [vmem:[%s494_s4] ss:$0 sm:$0xff]  ;;  %s321_s20 = scalar_lea.vmem %s223_s2, 32  ;;  %p326_p1 = scmp.lt.s32.totalorder %s223_s2, %s223_s2 }
   0xe   :  { %273 = vmatpush3.msra.mxu0 %v24_v7  ;;  %289 = vmatprep.subr.mxu1 %v343_v1  ;;  %p322_p0 = scmp.ne.s32.totalorder %s223_s2, %s321_s20  ;;  %p327_p2 = scmp.lt.s32.totalorder %s321_s20, %s321_s20 }
   0xf   :  { %274 = vmatprep.subr.mxu0 %v343_v1  ;;  %290 = vmatpush3.msra.mxu1 %v132_v15 }
  0x10   :  { %275 = vmatpush3.msra.mxu0 %v23_v8  ;;  %291 = vmatprep.subr.mxu1 %v343_v1  ;;  %p328_p3 = por %p327_p2, %p326_p1 }
  0x11   :  { %276 = vmatprep.subr.mxu0 %v343_v1  ;;  %292 = vmatpush3.msra.mxu1 %v131_v16 }
  0x12   :  { %277 = vmatpush3.msra.mxu0 %v22_v9  ;;  %293 = vmatprep.subr.mxu1 %v343_v1  ;;  %p329_p4 = pnand %p328_p3, %p322_p0 }
  0x13   :  { %279 = vmatmul.mubr.msk.f32.vlgmr.msra.gmra.mxu0 %vm38_vm1, %v21_v10  ;;  %294 = vmatpush3.msra.mxu1 %v130_v17 }
  0x14   :  { %295 = vmatprep.subr.mxu1 %v343_v1 }
  0x15   :  { %296 = vmatpush3.msra.mxu1 %v129_v18 }
  0x16   :  { %297 = vmatprep.subr.mxu1 %v343_v1 }
  0x17   :  { %298 = vmatpush3.msra.mxu1 %v128_v19 }
  0x18   :  { %299 = vmatprep.subr.mxu1 %v343_v1 }
  0x19   :  { %300 = vmatpush3.msra.mxu1 %v127_v20 }
  0x1a   :  { %301 = vmatprep.subr.mxu1 %v343_v1 }
  0x1b   :  { %302 = vmatpush3.msra.mxu1 %v126_v21 }
  0x1c   :  { %303 = vmatprep.subr.mxu1 %v343_v1 }
  0x1d   :  { %304 = vmatpush3.msra.mxu1 %v125_v22 }
  0x1e   :  { %305 = vmatprep.subr.mxu1 %v343_v1 }
  0x1f   :  { %306 = vmatpush3.msra.mxu1 %v124_v23 }
  0x20   :  { %307 = vmatprep.subr.mxu1 %v343_v1 }
  0x21   :  { %308 = vmatpush3.msra.mxu1 %v123_v24 }
  0x22   :  { %309 = vmatprep.subr.mxu1 %v343_v1 }
  0x23   :  { %310 = vmatpush3.msra.mxu1 %v122_v25 }
  0x24   :  { %311 = vmatprep.subr.mxu1 %v343_v1 }
  0x25   :  { %312 = vmatpush3.msra.mxu1 %v121_v26 }
  0xd3   :  { %v108_v28 = vpop.f32.mrf.mxu0 }
  0xd4   :  { %v109_v29 = vadd.f32 %v230_v27, %v108_v28 }
  0xd5   :  { %v280_v30 = vpop.f32.mrf.mxu0 }
  0xd6   :  { %v112_v31 = vmul.f32 %v109_v29, %v109_v29 }
  0xd8   :  { %v113_v32 = vmul.f32 %v112_v31, %v109_v29 }
  0xda   :  { %v114_v33 = vmul.f32 0.044715, %v113_v32 }
  0xdc   :  { %v115_v34 = vadd.f32 %v114_v33, %v109_v29 }
  0xde   :  { %v116_v35 = vmul.f32 0.7978846, %v115_v34 }
  0xe0   :  { %319 = vtanh.f32 %v116_v35 }
  0xed   :  { %v320_v36 = vpop.eup %319 }
  0xee   :  { %v118_v37 = vadd.f32 1.0, %v320_v36 }
  0xf0   :  { %v119_v38 = vmul.f32 0.5, %v118_v37 }
  0xf2   :  { %v120_v39 = vmul.f32 %v119_v38, %v109_v29 }
  0xf4   :  { %314 = vmatmul.mubr.f32.vlgmr.msra.gmra.mxu1 %v120_v39 }
 0x1b4   :  { %v210_v41 = vpop.f32.mrf.mxu1 }
 0x1b5   :  { %v211_v42 = vadd.f32 %v232_v40, %v210_v41 }
 0x1b6   :  { %v315_v43 = vpop.f32.mrf.mxu1 }
 0x1b7   :  { %215 = vst.msk [vmem:[#allocation2] sm:$0x3] %vm214_vm2, %v211_v42 }
 0x1b8   :  { %332 = shalt.err (!%p329_p4)
}
 0x1b9   :  { %225 = dma.vmem_to_hbm [thread:$0]  %s223_s2, 32, %s495_s5, [#allocation3]  }
 0x1ba   :  { %341 = dma.done.wait [#allocation3], 32  }
 0x1bb   :  { %342 = vsyncadd [#allocation3], 4294967264 }
 0x1bc   :  { %229 = vsyncpa [#allocation3], 1 }

</bundles_post_ra>
